<compile_context>
chip_gen: v7x
topology: tpu7x:2x2x1
jax: 0.10.0
libtpu: 0.0.40
codegen_flags: <defaults>
</compile_context>

<pallas_src>
import numpy as np

import jax
import jax.numpy as jnp
from jax.experimental import pallas as pl
from jax.experimental.pallas import tpu as pltpu


# ----------------------------- kernels ------------------------------------ #

def _masked_logsoftmax_kernel(fill_ref, x_ref, span_ref, o_ref):
    """Training path: per-row masked log_softmax in f32.

    fill_ref : (1,) f32 in SMEM  -- global_min(inputs) - 20
    x_ref    : (T, C) inputs tile
    span_ref : (T, 1) int32, packed (start | width << 16) per row
    """
    fill = fill_ref[0]
    span = span_ref[...]                                   # (T, 1) int32
    start = span & 0xFFFF
    width = span >> 16                                      # span >= 0 (C < 32768)

    x = x_ref[...].astype(jnp.float32)                      # (T, C)
    col = jax.lax.broadcasted_iota(jnp.int32, x.shape, 1)   # lane index
    # single unsigned range check instead of two compares + AND
    keep = (col - start).astype(jnp.uint32) < width.astype(jnp.uint32)

    xm = jnp.where(keep, x, fill)
    row_max = jnp.max(xm, axis=-1, keepdims=True)
    shifted = xm - row_max
    lse = jnp.log(jnp.sum(jnp.exp(shifted), axis=-1, keepdims=True))
    o_ref[...] = (shifted - lse).astype(o_ref.dtype)


def _masked_fill_min_kernel(x_ref, span_ref, o_ref):
    """Eval path: masked_fill(~mask, finfo(dtype).min)."""
    span = span_ref[...]
    start = span & 0xFFFF
    width = span >> 16
    col = jax.lax.broadcasted_iota(jnp.int32, x_ref.shape, 1)
    keep = (col - start).astype(jnp.uint32) < width.astype(jnp.uint32)
    fill = jnp.asarray(jnp.finfo(o_ref.dtype).min, dtype=o_ref.dtype)
    o_ref[...] = jnp.where(keep, x_ref[...], fill).astype(o_ref.dtype)


# ----------------------------- helpers ------------------------------------ #

def _round_up(x, m):
    return (x + m - 1) // m * m


def _vmem_limit_bytes():
    """Scoped-VMEM limit derived from the chip (64 MiB/TC on v7x, 128 MiB on
    v5e/v6e), leaving ~25% headroom for Mosaic internals."""
    try:
        cap = int(pltpu.get_tpu_info().vmem_capacity_bytes)
    except Exception:
        cap = 64 * 1024 * 1024
    return min((cap * 3) // 4, 96 * 1024 * 1024)


def _pick_row_tile(n, c, itemsize, vmem_limit_bytes):
    """Size row tiles strictly by bytes (no hard row cap):

    * target input-tile ~ vmem_limit/12 (≈4 MiB on v7x, ≈8 MiB on v5e/v6e),
      which leaves room for double-buffered in/out tiles plus the f32
      temporaries Mosaic materializes around the two row reductions.
    * keep at least 4 grid steps so both v7x TensorCores get work and
      DMA/compute overlap survives even for mid-sized N.
    """
    sub = max(8, 32 // max(1, itemsize))        # 8 rows f32, 16 bf16, 32 int8
    target = max(1 << 20, min(8 << 20, vmem_limit_bytes // 12))
    rows = max(sub, target // max(1, c * itemsize))
    rows = min(rows, _round_up(pl.cdiv(n, 4), sub))
    rows = max(sub, (rows // sub) * sub)
    return int(rows)


def _check_contiguous_spans(mask):
    """Assert each mask row is a single contiguous True span (as the module's
    __init__ builds it). Skipped when `mask` is a tracer."""
    try:
        m = np.asarray(mask)
    except Exception:
        return
    starts = m.argmax(axis=1)
    widths = m.sum(axis=1)
    cols = np.arange(m.shape[1])[None, :]
    rebuilt = (cols >= starts[:, None]) & (cols < (starts + widths)[:, None])
    assert np.array_equal(rebuilt, m), (
        "MaskLogsoftmax mask rows must each be one contiguous True span")


# ----------------------------- wrapper ------------------------------------ #

def mask_logsoftmax(inputs, mask, mask_id, training=True, row_tile=None,
                    min_pallas_classes=64):
    """JAX/Pallas equivalent of MaskLogsoftmax.forward.

    inputs:  [N, C] float
    mask:    [num_sources, C] bool (one contiguous True span per row)
    mask_id: [N] int
    """
    n, c = inputs.shape
    num_sources, c_mask = mask.shape
    assert c_mask == c, (mask.shape, inputs.shape)
    assert c < 32768, "span packing assumes class_num < 32768"
    _check_contiguous_spans(mask)

    mask_id = mask_id.astype(jnp.int32)

    # Tiny class dims: the fused XLA expression is already at the HBM roofline
    # and avoids partial-lane stores; the Pallas path pays off for lane-dense C.
    if c < min_pallas_classes:
        gathered = mask[mask_id]
        if training:
            fill = (jnp.min(inputs) - jnp.asarray(20, inputs.dtype)).astype(jnp.float32)
            xm = jnp.where(gathered, inputs.astype(jnp.float32), fill)
            return jax.nn.log_softmax(xm, axis=-1).astype(inputs.dtype)
        fillv = jnp.asarray(jnp.finfo(inputs.dtype).min, dtype=inputs.dtype)
        return jnp.where(gathered, inputs, fillv)

    # Mask rows are contiguous spans -> gather one packed int32 per row
    # instead of an [N, C] gathered-mask stream (or two span streams).
    starts_src = jnp.argmax(mask, axis=1).astype(jnp.int32)
    widths_src = jnp.sum(mask, axis=1).astype(jnp.int32)
    span_src = (starts_src | (widths_src << 16)).astype(jnp.int32)
    span = jnp.take(span_src, mask_id)[:, None]               # [N, 1] int32

    itemsize = jnp.dtype(inputs.dtype).itemsize
    vmem_limit = _vmem_limit_bytes()
    if row_tile is None:
        row_tile = _pick_row_tile(n, c, itemsize, vmem_limit)

    grid = (pl.cdiv(n, row_tile),)                            # ragged last tile OK
    x_spec = pl.BlockSpec((row_tile, c), lambda i: (i, 0))    # full-C block (any C)
    span_spec = pl.BlockSpec((row_tile, 1), lambda i: (i, 0))
    compiler_params = pltpu.CompilerParams(
        dimension_semantics=("parallel",),
        vmem_limit_bytes=vmem_limit,
    )

    if not training:
        return pl.pallas_call(
            _masked_fill_min_kernel,
            out_shape=jax.ShapeDtypeStruct((n, c), inputs.dtype),
            grid=grid,
            in_specs=[x_spec, span_spec],
            out_specs=x_spec,
            compiler_params=compiler_params,
        )(inputs, span)

    # Exact fill = inputs.min() - 20 (computed in inputs.dtype, then upcast,
    # matching torch); one XLA reduction pass, handed to the kernel via SMEM.
    fill = (jnp.min(inputs) - jnp.asarray(20, inputs.dtype)).astype(jnp.float32)
    fill = fill.reshape(1)

    return pl.pallas_call(
        _masked_logsoftmax_kernel,
        out_shape=jax.ShapeDtypeStruct((n, c), inputs.dtype),
        grid=grid,
        in_specs=[
            pl.BlockSpec(memory_space=pltpu.MemorySpace.SMEM),  # fill scalar
            x_spec,
            span_spec,
        ],
        out_specs=x_spec,
        compiler_params=compiler_params,
    )(fill, inputs, span)


# ------------------------- deterministic setup ----------------------------- #

def build_mask_param(encoder_lens):
    """Replicates the __init__ mask construction for synthetic dataset types."""
    num_sources = len(encoder_lens)
    total = sum(encoder_lens)
    mask = jnp.zeros((num_sources, total), dtype=jnp.bool_)
    shift = 0
    for sid, enc_len in enumerate(encoder_lens):
        mask = mask.at[sid, shift:shift + enc_len].set(True)
        shift += enc_len
    return mask


def _reference_train(inputs, mask, mask_id):
    gathered = mask[mask_id]
    fill = (jnp.min(inputs) - jnp.asarray(20, inputs.dtype)).astype(jnp.float32)
    masked = jnp.where(gathered, inputs.astype(jnp.float32), fill)
    return jax.nn.log_softmax(masked, axis=-1).astype(inputs.dtype)


def _reference_eval(inputs, mask, mask_id):
    gathered = mask[mask_id]
    fillv = jnp.asarray(jnp.finfo(inputs.dtype).min, dtype=inputs.dtype)
    return jnp.where(gathered, inputs, fillv)


if __name__ == "__main__":
    key = jax.random.PRNGKey(0)
    k1, k2, k3, k4 = jax.random.split(key, 4)

    # Case 1: C = 128 (lane-dense), ragged N (partial last row tile).
    encoder_lens = [40, 48, 40]                       # sum = 128 classes
    mask1 = build_mask_param(encoder_lens)            # [3, 128] bool
    n1, c1 = 250, mask1.shape[1]
    x1 = jax.random.normal(k1, (n1, c1), dtype=jnp.float32)
    id1 = jax.random.randint(k2, (n1,), 0, mask1.shape[0], dtype=jnp.int32)

    out1 = jax.block_until_ready(mask_logsoftmax(x1, mask1, id1, training=True))
    ref1 = _reference_train(x1, mask1, id1)
    assert out1.shape == (n1, c1)
    assert jnp.allclose(out1, ref1, atol=1e-5, rtol=1e-5), "train mismatch (C=128)"

    out1e = jax.block_until_ready(mask_logsoftmax(x1, mask1, id1, training=False))
    ref1e = _reference_eval(x1, mask1, id1)
    assert out1e.shape == (n1, c1)
    assert jnp.allclose(out1e, ref1e), "eval mismatch (C=128)"

    # Case 2: C = 192 (not a multiple of 128): full-C block + masked lane tail.
    encoder_lens2 = [64, 80, 48]                      # sum = 192 classes
    mask2 = build_mask_param(encoder_lens2)
    n2, c2 = 100, mask2.shape[1]
    x2 = jax.random.normal(k3, (n2, c2), dtype=jnp.float32)
    id2 = jax.random.randint(k4, (n2,), 0, mask2.shape[0], dtype=jnp.int32)

    out2 = jax.block_until_ready(mask_logsoftmax(x2, mask2, id2, training=True))
    ref2 = _reference_train(x2, mask2, id2)
    assert out2.shape == (n2, c2)
    assert jnp.allclose(out2, ref2, atol=1e-5, rtol=1e-5), "train mismatch (C=192)"

    print("KERNEL_OK")
</pallas_src>

<mosaic_0001>
module attributes {stable_mosaic.version = 11 : i64} {
  func.func @_masked_logsoftmax_kernel(%arg0: i32, %arg1: memref<1xf32, #tpu.memory_space<smem>>, %arg2: memref<64x128xf32, #tpu.memory_space<vmem>>, %arg3: memref<64x1xi32, #tpu.memory_space<vmem>>, %arg4: memref<64x128xf32, #tpu.memory_space<vmem>>) attributes {dimension_semantics = [#tpu.dimension_semantics<parallel>], iteration_bounds = array<i64: 4>, scalar_prefetch = 0 : i64, scratch_operands = 0 : i64, tpu.core_type = #tpu.core_type<tc>, window_params = [{transform_indices = @transform_0, window_bounds = array<i64: 1>}, {transform_indices = @transform_1, window_bounds = array<i64: 64, 128>}, {transform_indices = @transform_2, window_bounds = array<i64: 64, 1>}, {transform_indices = @transform_3, window_bounds = array<i64: 64, 128>}]} {
    %c0 = arith.constant 0 : index
    %0 = memref.load %arg1[%c0] : memref<1xf32, #tpu.memory_space<smem>>
    %c0_0 = arith.constant 0 : index
    %c0_1 = arith.constant 0 : index
    %1 = vector.load %arg3[%c0_0, %c0_1] : memref<64x1xi32, #tpu.memory_space<vmem>>, vector<64x1xi32>
    %c65535_i32 = arith.constant 65535 : i32
    %2 = vector.broadcast %c65535_i32 : i32 to vector<64x1xi32>
    %3 = arith.andi %1, %2 : vector<64x1xi32>
    %c16_i32 = arith.constant 16 : i32
    %4 = vector.broadcast %c16_i32 : i32 to vector<64x1xi32>
    %5 = arith.shrsi %1, %4 : vector<64x1xi32>
    %c0_2 = arith.constant 0 : index
    %c0_3 = arith.constant 0 : index
    %6 = vector.load %arg2[%c0_2, %c0_3] : memref<64x128xf32, #tpu.memory_space<vmem>>, vector<64x128xf32>
    %7 = tpu.iota {dimensions = array<i32: 1>} : vector<64x128xi32>
    %8 = vector.broadcast %3 : vector<64x1xi32> to vector<64x128xi32>
    %9 = arith.subi %7, %8 : vector<64x128xi32>
    %10 = vector.broadcast %5 : vector<64x1xi32> to vector<64x128xi32>
    %11 = arith.cmpi ult, %9, %10 : vector<64x128xi32>
    %12 = vector.broadcast %0 : f32 to vector<64x128xf32>
    %13 = arith.select %11, %6, %12 : vector<64x128xi1>, vector<64x128xf32>
    %cst = arith.constant dense<0xFF800000> : vector<64xf32>
    %14 = vector.multi_reduction <maximumf>, %13, %cst [1] : vector<64x128xf32> to vector<64xf32>
    %15 = vector.shape_cast %14 : vector<64xf32> to vector<64x1xf32>
    %16 = vector.broadcast %15 : vector<64x1xf32> to vector<64x128xf32>
    %17 = arith.subf %13, %16 : vector<64x128xf32>
    %18 = math.exp %17 : vector<64x128xf32>
    %cst_4 = arith.constant dense<0.000000e+00> : vector<64xf32>
    %19 = vector.multi_reduction <add>, %18, %cst_4 [1] : vector<64x128xf32> to vector<64xf32>
    %20 = vector.shape_cast %19 : vector<64xf32> to vector<64x1xf32>
    %21 = math.log %20 : vector<64x1xf32>
    %22 = vector.broadcast %21 : vector<64x1xf32> to vector<64x128xf32>
    %23 = arith.subf %17, %22 : vector<64x128xf32>
    %c0_5 = arith.constant 0 : index
    %c0_6 = arith.constant 0 : index
    %24 = vector.load %arg4[%c0_5, %c0_6] : memref<64x128xf32, #tpu.memory_space<vmem>>, vector<64x128xf32>
    tpu.vector_store %arg4[%c0_5, %c0_6], %23 {strides = array<i32>} : memref<64x128xf32, #tpu.memory_space<vmem>>, vector<64x128xf32>,
    return
  }
  func.func @transform_0(%arg0: i32) -> i32 {
    %c0_i32 = arith.constant 0 : i32
    %c0_i32_0 = arith.constant 0 : i32
    return %c0_i32 : i32
  }
  func.func @transform_1(%arg0: i32) -> (i32, i32) {
    %c0_i32 = arith.constant 0 : i32
    %c0_i32_0 = arith.constant 0 : i32
    return %arg0, %c0_i32 : i32, i32
  }
  func.func @transform_2(%arg0: i32) -> (i32, i32) {
    %c0_i32 = arith.constant 0 : i32
    %c0_i32_0 = arith.constant 0 : i32
    return %arg0, %c0_i32 : i32, i32
  }
  func.func @transform_3(%arg0: i32) -> (i32, i32) {
    %c0_i32 = arith.constant 0 : i32
    %c0_i32_0 = arith.constant 0 : i32
    return %arg0, %c0_i32 : i32, i32
  }
}

</mosaic_0001>

<bundles_post_ra>
// kernel: tpu_custom_call.1
= control target key start
LH: loop header
LB: loop body
LE: loop exit
PB: predicated region body
PF: predicated region fallthrough
CT: control target
= control target key end

     0   :  { %s830_s0 = inlined_call_operand.<no memory space> [shape: f32[1], index: 0, kind: input, shape index: {}]   ;;  %s831_s1 = inlined_call_operand.vmem [shape: f32[250,128], index: 1, kind: input, shape index: {}]   ;;  %s832_s2 = inlined_call_operand.vmem [shape: s32[250,1], index: 2, kind: input, shape index: {}]   ;;  %s833_s3 = inlined_call_operand.hbm [shape: f32[250,128], index: 3, kind: output, shape index: {}]  }
   0x1   :  { %8 = sst [smem:[#allocation2]] %s830_s0 }
   0x2   :  { %9 = vsyncpa [#allocation4], 0 }
   0x3   :  { %11 = vsyncpa [#allocation4 + $0x1], 0  ;;  %s661_s14 = smov 0   ;;  %s663_s15 = smov 0  }
   0x4   :  { %s665_s16 = smov 0   ;;  %s667_s17 = smov 0  }
   0x5 LB: > { %s682_s0 = sadd.s32 4294967295, %s632_s17   ;;  %s479_s18 = sadd.s32 4294967294, %s632_s17   ;;  %s632_s17 = sphi %s667_s17, %s839_s17   ;;  %s628_s16 = sphi %s665_s16, %s838_s16   ;;  %s624_s15 = sphi %s663_s15, %s837_s15   ;;  %s620_s14 = sphi %s661_s14, %s836_s14  }
   0x6   : > { %s686_s19 = sadd.s32 1, %s632_s17   ;;  %s97_s20 = sadd.s32 1, %s628_s16 }
   0x7   : > { %s94_s21 = ssub.s32 %s632_s17, %s686_s19  ;;  %p107_p0 = scmp.ne.s32.totalorder %s628_s16, %s624_s15 }
   0x8   : > { %p95_p1 = scmp.eq.s32.totalorder %s94_s21, 0  ;;  %p108_p2 = scmp.eq.s32.totalorder %s682_s0, 3 }
   0x9   : > { %p113_p3 = scmp.ne.s32.totalorder %s624_s15, %s620_s14  ;;  %p114_p4 = scmp.eq.s32.totalorder %s479_s18, 3 }
   0xa   : > { %s697_s22 = scalar_select %p95_p1, %s628_s16, %s97_s20  }
   0xb   : > { %p699_p5 = por %p108_p2, %p107_p0  ;;  %p703_p6 = por %p114_p4, %p113_p3 }
   0xc   : > { %p482_p7 = scmp.ge.s32.totalorder %s632_s17, 1  ;;  %p153_p8 = scmp.lt.s32.totalorder %s632_s17, 5 }
   0xe   : > { %p154_p9 = pnand %p482_p7, %p153_p8 }
   0xf   : > { %s484_s25 = sshll.u32 (!%p154_p9), %s682_s0, 3  ;;  %v634_v0 = vmov (!%p154_p9), 0   ;;  %v228_v29 = vlaneseq (!%p154_p9)  ;;  %s195_s30 = sld [smem:[#allocation2]] (!%p154_p9) }
  0x10   : > { %157 = sbr.rel (%p154_p9) target bundleno = 521 (0x209), region = 32  ;;  %537 = vset.pattern.permute.xlu1 (!%p154_p9), %v634_v0  ;;  %536 = vset.pattern.permute.xlu0 (!%p154_p9), %v634_v0  ;;  %p183_p10 = scmp.lt.s32.totalorder (!%p154_p9), %s484_s25, 31 }
  0x11   : > { %v229_v32 = vand.u32 (!%p154_p9), 127, %v228_v29  ;;  %s179_s7 = sand.u32 (!%p154_p9), 1, %s624_s15   ;;  %s493_s10 = sshll.u32 (!%p154_p9), %s682_s0, 10 }
  0x12   : > { %s483_s8 = sshll.u32 (!%p154_p9), %s179_s7, 6  ;;  %s781_s18 = scalar_lea.hbm (!%p154_p9), %s833_s3, %s493_s10 }
  0x13   : > { %s762_s9 = scalar_lea.vmem (!%p154_p9), [#allocation3], %s483_s8  ;;  %s789_s0 = scalar_lea.sflag (!%p154_p9), [#allocation4], %s179_s7 }
  0x14   : > { %s405_s11 = sshll.u32 (!%p154_p9), %s762_s9, 4  ;;  %s635_s21 = smov (!%p154_p9), [#allocation3]   ;;  %s783_s11 = int_to_ptr.vmem [resolvable:$true] %s405_s11 }
  0x15   : > { %v294_v38 = vstv (!%p154_p9), %s195_s30  ;;  %s570_s20 = scalar_lea.vmem (!%p154_p9), %s783_s11, 1024 }
  0x16   : > { %p571_p11 = scmp.ne.s32.totalorder (!%p154_p9), %s783_s11, %s570_s20 }
  0x17   : > { %s841_s25 = smov (!%p183_p10, %s484_s25), 31 }
  0x18   : > { %s485_s26 = sshll.u32 %s841_s25, 3  ;;  %p572_p12 = pnand %p571_p11, %p699_p5 }
  0x19   : > { %s192_s29 = scalar_lea.vmem %s832_s2, %s485_s26  ;;  %s723_s6 = scalar_lea.vmem %s831_s1, %s485_s26 }
  0x1a   : > { %v198_v1 = vld [vmem:[%s192_s29 + $0x10] sm:$0xff]  ;;  %v196_v2 = vld [vmem:[%s192_s29] sm:$0xff]  ;;  %v199_v3 = vld [vmem:[%s192_s29 + $0x18] sm:$0xff]  ;;  %p573_p13 = pneg %p572_p12  ;;  %s574_s25 = sshll.u32 %s635_s21, 4  ;;  %s575_s25 = int_to_ptr.vmem [resolvable:$false] %s574_s25 }
  0x1b   : > { %v206_v4 = vand.u32 65535, %v198_v1  ;;  %v204_v5 = vand.u32 65535, %v196_v2  ;;  %v197_v6 = vld [vmem:[%s192_s29 + $0x8] sm:$0xff]  ;;  %v207_v7 = vand.u32 65535, %v199_v3  ;;  %v200_v10 = vld [vmem:[%s192_s29 + $0x20] sm:$0xff]  ;;  %v203_v13 = vld [vmem:[%s192_s29 + $0x38] sm:$0xff]  ;;  %p577_p0 = scmp.lt.s32.totalorder %s783_s11, %s575_s25 }
  0x1c   : > { %v205_v8 = vand.u32 65535, %v197_v6  ;;  %v201_v9 = vld [vmem:[%s192_s29 + $0x28] sm:$0xff]  ;;  %v208_v12 = vand.u32 65535, %v200_v10  ;;  %v202_v14 = vld [vmem:[%s192_s29 + $0x30] sm:$0xff]  ;;  %v211_v15 = vand.u32 65535, %v203_v13  ;;  %v212_v17 = vshra.s32 %v196_v2, 16 }
  0x1d   : > { %237 = vperm.xlu1 %537, %v206_v4   ;;  %231 = vperm.xlu0 %536, %v204_v5   ;;  %v209_v11 = vand.u32 65535, %v201_v9  ;;  %v210_v16 = vand.u32 65535, %v202_v14  ;;  %v213_v18 = vshra.s32 %v197_v6, 16  ;;  %v214_v19 = vshra.s32 %v198_v1, 16  ;;  %v221_v37 = vld [vmem:[%s723_s6 + $0x8] sm:$0xff]  ;;  %v220_v39 = vld [vmem:[%s723_s6] sm:$0xff] }
  0x1e   : > { %v215_v20 = vshra.s32 %v199_v3, 16  ;;  %v217_v21 = vshra.s32 %v201_v9, 16  ;;  %v216_v22 = vshra.s32 %v200_v10, 16  ;;  %v219_v23 = vshra.s32 %v203_v13, 16  ;;  %v222_v45 = vld [vmem:[%s723_s6 + $0x10] sm:$0xff]  ;;  %v224_v51 = vld [vmem:[%s723_s6 + $0x20] sm:$0xff] }
  0x1f   : > { %v218_v24 = vshra.s32 %v202_v14, 16  ;;  %v223_v52 = vld [vmem:[%s723_s6 + $0x18] sm:$0xff]  ;;  %v226_v59 = vld [vmem:[%s723_s6 + $0x30] sm:$0xff]  ;;  %v225_v60 = vld [vmem:[%s723_s6 + $0x28] sm:$0xff]  ;;  %s576_s26 = scalar_lea.vmem %s575_s25, 2048 }
  0x20   : > { %v227_v2 = vld [vmem:[%s723_s6 + $0x38] sm:$0xff]  ;;  %p578_p1 = scmp.lt.s32.totalorder %s576_s26, %s570_s20 }
  0x21   : > { %240 = vperm.xlu1 %537, %v207_v7   ;;  %234 = vperm.xlu0 %536, %v205_v8  }
  0x22   : > { %p579_p2 = por %p578_p1, %p577_p0 }
  0x24   : > { %p580_p3 = pnand %p579_p2, %p573_p13 }
  0x25   : > { %246 = vperm.xlu1 %537, %v209_v11   ;;  %243 = vperm.xlu0 %536, %v208_v12  }
  0x29   : > { %252 = vperm.xlu1 %537, %v211_v15   ;;  %249 = vperm.xlu0 %536, %v210_v16  }
  0x2d   : > { %266 = vperm.xlu1 %537, %v213_v18   ;;  %263 = vperm.xlu0 %536, %v212_v17  }
  0x31   : > { %272 = vperm.xlu1 %537, %v215_v20   ;;  %269 = vperm.xlu0 %536, %v214_v19  }
  0x35   : > { %278 = vperm.xlu1 %537, %v217_v21   ;;  %275 = vperm.xlu0 %536, %v216_v22  }
  0x39   : > { %284 = vperm.xlu1 %537, %v219_v23   ;;  %281 = vperm.xlu0 %536, %v218_v24  }
  0x9c   : > { %v238_v25 = vpop.permute.xlu1 %237  ;;  %v232_v26 = vpop.permute.xlu0 %231 }
  0x9d   : > { %v254_v35 = vsub.s32 %v229_v32, %v232_v26  ;;  %v256_v44 = vsub.s32 %v229_v32, %v238_v25 }
  0xa0   : > { %v241_v27 = vpop.permute.xlu1 %240  ;;  %v235_v28 = vpop.permute.xlu0 %234 }
  0xa1   : > { %v255_v36 = vsub.s32 %v229_v32, %v235_v28  ;;  %v257_v48 = vsub.s32 %v229_v32, %v241_v27 }
  0xa4   : > { %v247_v30 = vpop.permute.xlu1 %246  ;;  %v244_v31 = vpop.permute.xlu0 %243 }
  0xa5   : > { %v258_v50 = vsub.s32 %v229_v32, %v244_v31  ;;  %v259_v55 = vsub.s32 %v229_v32, %v247_v30 }
  0xa8   : > { %v253_v33 = vpop.permute.xlu1 %252  ;;  %v250_v34 = vpop.permute.xlu0 %249 }
  0xa9   : > { %v260_v58 = vsub.s32 %v229_v32, %v250_v34  ;;  %v261_v63 = vsub.s32 %v229_v32, %v253_v33 }
  0xac   : > { %v267_v40 = vpop.permute.xlu1 %266  ;;  %v264_v41 = vpop.permute.xlu0 %263 }
  0xad   : > { %vm287_vm0 = vcmp.lt.u32.totalorder %v255_v36, %v267_v40  ;;  %vm286_vm1 = vcmp.lt.u32.totalorder %v254_v35, %v264_v41 }
  0xae   : > { %v296_v42 = vsel %vm287_vm0, %v221_v37, %v294_v38  ;;  %v295_v43 = vsel %vm286_vm1, %v220_v39, %v294_v38 }
  0xaf   : > { %305 = vmax.xlane.f32.xlu1 %v296_v42  ;;  %303 = vmax.xlane.f32.xlu0 %v295_v43 }
  0xb0   : > { %v273_v46 = vpop.permute.xlu1 %272  ;;  %v270_v47 = vpop.permute.xlu0 %269 }
  0xb1   : > { %vm288_vm2 = vcmp.lt.u32.totalorder %v256_v44, %v270_v47  ;;  %vm289_vm3 = vcmp.lt.u32.totalorder %v257_v48, %v273_v46 }
  0xb2   : > { %v297_v49 = vsel %vm288_vm2, %v222_v45, %v294_v38  ;;  %v298_v57 = vsel %vm289_vm3, %v223_v52, %v294_v38 }
  0xb3   : > { %307 = vmax.xlane.f32.xlu0 %v297_v49 }
  0xb4   : > { %v279_v53 = vpop.permute.xlu1 %278  ;;  %v276_v54 = vpop.permute.xlu0 %275 }
  0xb5   : > { %vm290_vm4 = vcmp.lt.u32.totalorder %v258_v50, %v276_v54  ;;  %vm291_vm5 = vcmp.lt.u32.totalorder %v259_v55, %v279_v53 }
  0xb6   : > { %v299_v56 = vsel %vm290_vm4, %v224_v51, %v294_v38  ;;  %v300_v1 = vsel %vm291_vm5, %v225_v60, %v294_v38 }
  0xb7   : > { %311 = vmax.xlane.f32.xlu1 %v299_v56  ;;  %309 = vmax.xlane.f32.xlu0 %v298_v57 }
  0xb8   : > { %v285_v61 = vpop.permute.xlu1 %284  ;;  %v282_v62 = vpop.permute.xlu0 %281 }
  0xb9   : > { %vm292_vm6 = vcmp.lt.u32.totalorder %v260_v58, %v282_v62  ;;  %vm293_vm7 = vcmp.lt.u32.totalorder %v261_v63, %v285_v61 }
  0xba   : > { %v301_v0 = vsel %vm292_vm6, %v226_v59, %v294_v38  ;;  %v302_v3 = vsel %vm293_vm7, %v227_v2, %v294_v38 }
  0xbb   : > { %315 = vmax.xlane.f32.xlu1 %v301_v0  ;;  %313 = vmax.xlane.f32.xlu0 %v300_v1 }
  0xbf   : > { %317 = vmax.xlane.f32.xlu0 %v302_v3 }
 0x13c   : > { %v306_v4 = vpop.xlane.xlu1 %305  ;;  %v304_v5 = vpop.xlane.xlu0 %303 }
 0x13d   : > { %v733_v6 = vsub.f32 %v296_v42, %v306_v4  ;;  %v735_v7 = vsub.f32 %v295_v43, %v304_v5 }
 0x13f   : > { %v329_v8 = vmul.f32 1.442695, %v733_v6  ;;  %v327_v9 = vmul.f32 1.442695, %v735_v7 }
 0x140   : > { %v308_v10 = vpop.xlane.xlu0 %307 }
 0x141   : > { %538 = vpow2.f32 %v329_v8  ;;  %v739_v11 = vsub.f32 %v297_v49, %v308_v10 }
 0x142   : > { %540 = vpow2.f32 %v327_v9 }
 0x143   : > { %v331_v12 = vmul.f32 1.442695, %v739_v11 }
 0x144   : > { %v312_v13 = vpop.xlane.xlu1 %311  ;;  %v310_v14 = vpop.xlane.xlu0 %309 }
 0x145   : > { %542 = vpow2.f32 %v331_v12  ;;  %v742_v15 = vsub.f32 %v299_v56, %v312_v13  ;;  %v744_v16 = vsub.f32 %v298_v57, %v310_v14 }
 0x147   : > { %v335_v17 = vmul.f32 1.442695, %v742_v15  ;;  %v333_v18 = vmul.f32 1.442695, %v744_v16 }
 0x148   : > { %v316_v19 = vpop.xlane.xlu1 %315  ;;  %v314_v20 = vpop.xlane.xlu0 %313 }
 0x149   : > { %544 = vpow2.f32 %v335_v17  ;;  %v748_v21 = vsub.f32 %v301_v0, %v316_v19  ;;  %v750_v22 = vsub.f32 %v300_v1, %v314_v20 }
 0x14a   : > { %546 = vpow2.f32 %v333_v18 }
 0x14b   : > { %v539_v23 = vpop.eup %538  ;;  %v339_v24 = vmul.f32 1.442695, %v748_v21  ;;  %v337_v25 = vmul.f32 1.442695, %v750_v22 }
 0x14c   : > { %v541_v26 = vpop.eup %540  ;;  %345 = vadd.xlane.f32.xlu0 %v539_v23  ;;  %v318_v27 = vpop.xlane.xlu0 %317 }
 0x14d   : > { %548 = vpow2.f32 %v339_v24  ;;  %343 = vadd.xlane.f32.xlu1 %v541_v26  ;;  %v754_v28 = vsub.f32 %v302_v3, %v318_v27 }
 0x14e   : > { %550 = vpow2.f32 %v337_v25 }
 0x14f   : > { %v543_v29 = vpop.eup %542  ;;  %v341_v30 = vmul.f32 1.442695, %v754_v28 }
 0x151   : > { %552 = vpow2.f32 %v341_v30  ;;  %347 = vadd.xlane.f32.xlu1 %v543_v29 }
 0x153   : > { %v545_v31 = vpop.eup %544 }
 0x154   : > { %v547_v32 = vpop.eup %546 }
 0x155   : > { %351 = vadd.xlane.f32.xlu1 %v545_v31  ;;  %349 = vadd.xlane.f32.xlu0 %v547_v32 }
 0x157   : > { %v549_v33 = vpop.eup %548 }
 0x158   : > { %v551_v34 = vpop.eup %550 }
 0x159   : > { %355 = vadd.xlane.f32.xlu1 %v549_v33  ;;  %353 = vadd.xlane.f32.xlu0 %v551_v34 }
 0x15b   : > { %v553_v35 = vpop.eup %552 }
 0x15d   : > { %357 = vadd.xlane.f32.xlu0 %v553_v35 }
 0x1d9   : > { %v346_v36 = vpop.xlane.xlu0 %345 }
 0x1da   : > { %v344_v37 = vpop.xlane.xlu1 %343  ;;  %554 = vlog2.f32 %v346_v36 }
 0x1db   : > { %556 = vlog2.f32 %v344_v37 }
 0x1de   : > { %v348_v38 = vpop.xlane.xlu1 %347 }
 0x1df   : > { %558 = vlog2.f32 %v348_v38 }
 0x1e2   : > { %v352_v39 = vpop.xlane.xlu1 %351  ;;  %v350_v40 = vpop.xlane.xlu0 %349 }
 0x1e3   : > { %560 = vlog2.f32 %v352_v39 }
 0x1e4   : > { %v555_v41 = vpop.eup %554  ;;  %562 = vlog2.f32 %v350_v40 }
 0x1e5   : > { %v557_v42 = vpop.eup %556  ;;  %v362_v43 = vmul.f32 0.6931472, %v555_v41 }
 0x1e6   : > { %v360_v44 = vmul.f32 0.6931472, %v557_v42  ;;  %v356_v45 = vpop.xlane.xlu1 %355  ;;  %v354_v46 = vpop.xlane.xlu0 %353 }
 0x1e7   : > { %v376_v47 = vsub.f32 %v733_v6, %v362_v43  ;;  %564 = vlog2.f32 %v356_v45 }
 0x1e8   : > { %v375_v48 = vsub.f32 %v735_v7, %v360_v44  ;;  %566 = vlog2.f32 %v354_v46 }
 0x1e9   : > { %v559_v49 = vpop.eup %558  ;;  %384 = vst [vmem:[%s762_s9 + $0x8] sm:$0xff] %v376_v47 }
 0x1ea   : > { %383 = vst [vmem:[%s762_s9] sm:$0xff] %v375_v48  ;;  %v364_v50 = vmul.f32 0.6931472, %v559_v49  ;;  %v358_v51 = vpop.xlane.xlu0 %357 }
 0x1eb   : > { %568 = vlog2.f32 %v358_v51 }
 0x1ec   : > { %v377_v52 = vsub.f32 %v739_v11, %v364_v50 }
 0x1ed   : > { %v561_v53 = vpop.eup %560 }
 0x1ee   : > { %v563_v54 = vpop.eup %562  ;;  %385 = vst [vmem:[%s762_s9 + $0x10] sm:$0xff] %v377_v52  ;;  %v368_v55 = vmul.f32 0.6931472, %v561_v53 }
 0x1ef   : > { %v366_v56 = vmul.f32 0.6931472, %v563_v54 }
 0x1f0   : > { %v379_v57 = vsub.f32 %v742_v15, %v368_v55 }
 0x1f1   : > { %v565_v58 = vpop.eup %564  ;;  %v378_v59 = vsub.f32 %v744_v16, %v366_v56 }
 0x1f2   : > { %v567_v60 = vpop.eup %566  ;;  %387 = vst [vmem:[%s762_s9 + $0x20] sm:$0xff] %v379_v57  ;;  %v372_v61 = vmul.f32 0.6931472, %v565_v58 }
 0x1f3   : > { %386 = vst [vmem:[%s762_s9 + $0x18] sm:$0xff] %v378_v59  ;;  %v370_v62 = vmul.f32 0.6931472, %v567_v60 }
 0x1f4   : > { %v381_v63 = vsub.f32 %v748_v21, %v372_v61 }
 0x1f5   : > { %v569_v0 = vpop.eup %568  ;;  %v380_v1 = vsub.f32 %v750_v22, %v370_v62 }
 0x1f6   : > { %389 = vst [vmem:[%s762_s9 + $0x30] sm:$0xff] %v381_v63  ;;  %v374_v2 = vmul.f32 0.6931472, %v569_v0 }
 0x1f7   : > { %388 = vst [vmem:[%s762_s9 + $0x28] sm:$0xff] %v380_v1 }
 0x1f8   : > { %v382_v3 = vsub.f32 %v754_v28, %v374_v2 }
 0x1fa   : > { %390 = vst [vmem:[%s762_s9 + $0x38] sm:$0xff] %v382_v3 }
 0x1fb   : > { %583 = shalt.err (!%p580_p3)
}
 0x1fc   : > { %s584_s27 = scalar_lea.hbm %s781_s18, 1024  ;;  %s588_s30 = scalar_lea.hbm %s833_s3, 4096 }
 0x1fd   : > { %p585_p4 = scmp.ne.s32.totalorder %s781_s18, %s584_s27  ;;  %p589_p9 = scmp.lt.u32.totalorder %s781_s18, %s833_s3 }
 0x1fe   : > { %p590_p10 = scmp.lt.u32.totalorder %s588_s30, %s584_s27  ;;  %p592_p12 = scmp.lt.u32.totalorder %s584_s27, %s781_s18 }
 0x1ff   : > { %p586_p7 = pnand %p585_p4, %p699_p5 }
 0x200   : > { %p591_p11 = por %p590_p10, %p589_p9 }
 0x201   : > { %p587_p8 = pneg %p586_p7 }
 0x202   : > { %p593_p13 = por %p592_p12, %p591_p11 }
 0x204   : > { %p594_p0 = pnand %p593_p13, %p587_p8 }
 0x206   : > { %597 = shalt.err (!%p594_p0)
}
 0x207   : > { %s636_s6 = smov 128   ;;  %s637_s7 = smov 8  }
 0x208   : > { %494 = dma.vmem_to_hbm [thread:$0]  (%p699_p5), %s783_s11, 1024, %s781_s18, %s789_s0, %s636_s6, %s636_s6, %s637_s7  }
 0x209 PF: > { %p500_p1 = scmp.ge.s32.totalorder %s632_s17, 2  ;;  %s420_s8 = sand.u32 1, %s620_s14  }
 0x20a   : > { %s421_s9 = scalar_lea.sflag [#allocation4], %s420_s8 }
 0x20b   : > { %p497_p2 = pnand %p500_p1, %p703_p6 }
 0x20d   : > { %615 = dma.done.wait (!%p497_p2), %s421_s9, 1024  }
 0x20e   : > { %617 = vsyncadd (!%p497_p2), %s421_s9, 4294966272  ;;  %p14_p3 = scmp.ge.s32.totalorder %s686_s19, 6   ;;  %s836_s14 = smov %s624_s15 }
 0x20f   : > { %s837_s15 = smov %s628_s16  ;;  %s838_s16 = smov %s697_s22 }
 0x210   : > { %s839_s17 = smov %s686_s19  ;;  %16 = sbr.rel (!%p14_p3) target bundleno = 5 (0x5), region = 70 }
 0x217   :  { %426 = vsyncpa [#allocation4], 1 }
 0x218   :  { %428 = vsyncpa [#allocation4 + $0x1], 1 }

</bundles_post_ra>
